<compile_context>
chip_gen: v7x
topology: tpu7x:2x2x1
jax: 0.10.0
libtpu: 0.0.40
codegen_flags: <defaults>
</compile_context>

<pallas_src>
import functools

import jax
import jax.numpy as jnp
from jax import lax
from jax.experimental import pallas as pl
from jax.experimental.pallas import tpu as pltpu


def _deepwalk_lse_kernel(center_ref, w_ref, lse_ref, m_ref, l_ref, *,
                         tile_n, tiles_per_shard, n_valid, need_mask):
    s = pl.program_id(0)   # table shard   ("parallel" -> megacore on v7x)
    k = pl.program_id(1)   # tile in shard ("arbitrary" -> streaming reduction)

    @pl.when(k == 0)
    def _init():
        m_ref[...] = jnp.full_like(m_ref, -jnp.inf)
        l_ref[...] = jnp.zeros_like(l_ref)

    # Logits for this weight tile: [B, tile_n].  Contract on D with the
    # weight in its native [N, D] layout (transposed-RHS matmul on the MXU).
    c = center_ref[...].astype(w_ref.dtype)
    logits = lax.dot_general(
        c, w_ref[...],
        dimension_numbers=(((1,), (1,)), ((), ())),
        preferred_element_type=jnp.float32)

    if need_mask:
        row = (s * tiles_per_shard + k) * tile_n + lax.broadcasted_iota(
            jnp.int32, logits.shape, 1)
        valid = row < n_valid
        logits = jnp.where(valid, logits, jnp.float32(-1e30))

    # Online (streaming) log-sum-exp update.
    m_prev = m_ref[...]                                            # [B, 1]
    m_new = jnp.maximum(m_prev, jnp.max(logits, axis=1, keepdims=True))
    p = jnp.exp(logits - m_new)
    if need_mask:
        # Explicit zeroing keeps an all-padding shard exact (partial lse ->
        # -inf, which the logaddexp combine in the wrapper ignores).
        p = jnp.where(valid, p, jnp.float32(0.0))
    l_ref[...] = jnp.exp(m_prev - m_new) * l_ref[...] + jnp.sum(
        p, axis=1, keepdims=True)
    m_ref[...] = m_new

    @pl.when(k == pl.num_programs(1) - 1)
    def _finalize():
        lse_ref[...] = m_ref[...] + jnp.log(l_ref[...])


def _vmem_limit_bytes():
    """Per-generation scoped-VMEM limit: ~48 MiB on 64-MiB chips (v7x),
    ~112 MiB on 128-MiB chips (v5e/v6e)."""
    try:
        cap = int(pltpu.get_tpu_info().vmem_capacity_bytes)
    except Exception:
        cap = 64 << 20          # conservative fallback (v7x-sized VMEM)
    return max(32 << 20, min(cap - (16 << 20), 112 << 20))


def _pick_tile_n(n, d, b, itemsize, vmem_limit, num_shards):
    """Biggest 128-multiple tile that fits the VMEM budget (double-buffered
    weight tile + [B, tile_n] f32 logits/exp temporaries), capped per the
    v7x-safe limits (bf16 <= 32k rows, f32 <= 16k rows)."""
    budget = int(vmem_limit * 0.6)
    per_row = 2 * d * itemsize + 2 * b * 4
    t = budget // per_row
    t = min(t, 32768 if itemsize <= 2 else 16384)
    shard_rows = -(-n // num_shards)             # ceil
    shard_rows = -(-shard_rows // 128) * 128     # round up to 128
    t = min(t, shard_rows)
    return max(128, (int(t) // 128) * 128)


def deepwalk_forward(embedding_weight, center_ids, context_ids, *,
                     tile_n=None, matmul_dtype=jnp.bfloat16, num_shards=2):
    """embedding_weight: [N, D] f32; center_ids/context_ids: [B] int32.

    tile_n       : rows per streamed weight tile (multiple of 128).  Default
                   (None) auto-sizes from the chip's VMEM capacity, targeting
                   multi-MiB per-step DMAs.
    matmul_dtype : dtype the table is streamed in (bf16 halves HBM traffic;
                   accumulation and LSE stay f32).  jnp.float32 matches torch
                   semantics up to accumulation order.
    num_shards   : leading "parallel" grid axis; 2 lets v7x's two TensorCores
                   each stream half the table (harmless on v5e/v6e).
    """
    N, D = embedding_weight.shape
    B = center_ids.shape[0]

    # Embedding lookups + positive-pair dot product: tiny B x D work, done in
    # plain JAX (f32, matches torch exactly).
    # TODO(synk): move the gather in-kernel via PrefetchScalarGridSpec +
    # pl.Element row blocks if B is ever tiled up; negligible at B=8.
    center_embed = jnp.take(embedding_weight, center_ids, axis=0)    # [B, D]
    context_embed = jnp.take(embedding_weight, context_ids, axis=0)  # [B, D]
    pos = jnp.sum(center_embed * context_embed, axis=1, keepdims=True)

    vmem_limit = _vmem_limit_bytes()
    itemsize = jnp.dtype(matmul_dtype).itemsize
    num_shards = max(1, int(num_shards))
    if tile_n is None:
        tile_n = _pick_tile_n(N, D, B, itemsize, vmem_limit, num_shards)
    else:
        tile_n = max(128, (int(tile_n) // 128) * 128)

    tiles_per_shard = -(-N // (num_shards * tile_n))   # ceil
    padded_n = num_shards * tiles_per_shard * tile_n
    need_mask = padded_n != N

    # Stream the table in its native [N, D] layout (no .T), in matmul_dtype.
    w = embedding_weight.astype(matmul_dtype)
    if padded_n != N:
        w = jnp.pad(w, ((0, padded_n - N), (0, 0)))
    center_in = center_embed.astype(matmul_dtype)   # one-off cast in wrapper

    kernel = functools.partial(
        _deepwalk_lse_kernel, tile_n=tile_n, tiles_per_shard=tiles_per_shard,
        n_valid=N, need_mask=need_mask)

    grid_spec = pltpu.PrefetchScalarGridSpec(
        num_scalar_prefetch=0,
        grid=(num_shards, tiles_per_shard),
        in_specs=[
            pl.BlockSpec((B, D), lambda s, k: (0, 0)),        # center (resident)
            pl.BlockSpec((tile_n, D),                          # streamed weights
                         lambda s, k: (s * tiles_per_shard + k, 0)),
        ],
        # Per-shard partial lse: indexed by the parallel axis (no write race),
        # constant along the arbitrary axis (VMEM-resident accumulator).
        out_specs=pl.BlockSpec((B, 1), lambda s, k: (s, 0)),
        scratch_shapes=[
            pltpu.VMEM((B, 1), jnp.float32),   # running max
            pltpu.VMEM((B, 1), jnp.float32),   # running sum of exp
        ],
    )

    partial_lse = pl.pallas_call(
        kernel,
        out_shape=jax.ShapeDtypeStruct((num_shards * B, 1), jnp.float32),
        grid_spec=grid_spec,
        compiler_params=pltpu.CompilerParams(
            dimension_semantics=("parallel", "arbitrary"),
            vmem_limit_bytes=vmem_limit,
        ),
    )(center_in, w)

    # Tiny JAX epilogue: combine per-shard partial LSEs, apply positive term.
    partial_lse = partial_lse.reshape(num_shards, B, 1)
    lse = partial_lse[0]
    for s in range(1, num_shards):
        lse = jnp.logaddexp(lse, partial_lse[s])
    return -(pos - lse)


def deepwalk_reference(embedding_weight, center_ids, context_ids,
                       matmul_dtype=jnp.float32):
    ce = jnp.take(embedding_weight, center_ids, axis=0)
    cx = jnp.take(embedding_weight, context_ids, axis=0)
    logits = jnp.dot(ce.astype(matmul_dtype),
                     embedding_weight.astype(matmul_dtype).T,
                     preferred_element_type=jnp.float32)
    pos = jnp.sum(ce * cx, axis=1, keepdims=True)
    m = jnp.max(logits, axis=1, keepdims=True)
    lse = m + jnp.log(jnp.sum(jnp.exp(logits - m), axis=1, keepdims=True))
    return -(pos - lse)


if __name__ == "__main__":
    num_nodes = 200        # deliberately NOT a multiple of the tile -> tail mask
    embedding_dim = 128
    batch = 8

    key = jax.random.PRNGKey(0)
    k_w, k_c, k_x = jax.random.split(key, 3)

    embedding_weight = jax.random.normal(
        k_w, (num_nodes, embedding_dim), dtype=jnp.float32)
    center_ids = jax.random.randint(k_c, (batch,), 0, num_nodes, dtype=jnp.int32)
    context_ids = jax.random.randint(k_x, (batch,), 0, num_nodes, dtype=jnp.int32)

    # 1) exact-semantics path: f32 weights vs f32 reference (auto tile_n,
    #    2-way shard split -> exercises the tail mask + logaddexp combine).
    out_f32 = jax.block_until_ready(
        deepwalk_forward(embedding_weight, center_ids, context_ids,
                         matmul_dtype=jnp.float32))
    ref_f32 = deepwalk_reference(embedding_weight, center_ids, context_ids)
    assert out_f32.shape == (batch, 1)
    assert jnp.allclose(out_f32, ref_f32, atol=2e-3, rtol=5e-4), (
        float(jnp.max(jnp.abs(out_f32 - ref_f32))))

    # 2) bandwidth-optimized path: bf16 streamed weights, f32 accumulation/LSE.
    out_bf16 = jax.block_until_ready(
        deepwalk_forward(embedding_weight, center_ids, context_ids,
                         matmul_dtype=jnp.bfloat16))
    ref_bf16 = deepwalk_reference(embedding_weight, center_ids, context_ids,
                                  matmul_dtype=jnp.bfloat16)
    assert jnp.allclose(out_bf16, ref_bf16, atol=5e-3, rtol=5e-3), (
        float(jnp.max(jnp.abs(out_bf16 - ref_bf16))))

    # 3) single-shard path (num_shards=1) for completeness.
    out_1 = jax.block_until_ready(
        deepwalk_forward(embedding_weight, center_ids, context_ids,
                         matmul_dtype=jnp.float32, num_shards=1))
    assert jnp.allclose(out_1, ref_f32, atol=2e-3, rtol=5e-4)

    print("KERNEL_OK")
</pallas_src>

<mosaic_0001>
module attributes {stable_mosaic.version = 11 : i64} {
  func.func @_deepwalk_lse_kernel(%arg0: i32, %arg1: i32, %arg2: memref<8x128xf32, #tpu.memory_space<vmem>>, %arg3: memref<128x128xf32, #tpu.memory_space<vmem>>, %arg4: memref<8x1xf32, #tpu.memory_space<vmem>>, %arg5: memref<8x1xf32, #tpu.memory_space<vmem>>, %arg6: memref<8x1xf32, #tpu.memory_space<vmem>>) attributes {dimension_semantics = [#tpu.dimension_semantics<parallel>, #tpu.dimension_semantics<arbitrary>], iteration_bounds = array<i64: 2, 1>, scalar_prefetch = 0 : i64, scratch_operands = 2 : i64, tpu.core_type = #tpu.core_type<tc>, window_params = [{pipeline_mode = #tpu.pipeline_mode<synchronous>, transform_indices = @transform_0, window_bounds = array<i64: 8, 128>}, {transform_indices = @transform_1, window_bounds = array<i64: 128, 128>}, {transform_indices = @transform_2, window_bounds = array<i64: 8, 1>}]} {
    %c0_i32 = arith.constant 0 : i32
    %0 = arith.cmpi eq, %arg1, %c0_i32 : i32
    %1 = arith.extui %0 : i1 to i32
    %c0_i32_0 = arith.constant 0 : i32
    %2 = arith.cmpi ne, %1, %c0_i32_0 : i32
    scf.if %2 {
      %cst_18 = arith.constant 0xFF800000 : f32
      %37 = vector.broadcast %cst_18 : f32 to vector<8x1xf32>
      %c0_19 = arith.constant 0 : index
      %c0_20 = arith.constant 0 : index
      %38 = vector.load %arg5[%c0_19, %c0_20] : memref<8x1xf32, #tpu.memory_space<vmem>>, vector<8x1xf32>
      tpu.vector_store %arg5[%c0_19, %c0_20], %37 {strides = array<i32>} : memref<8x1xf32, #tpu.memory_space<vmem>>, vector<8x1xf32>,
      %cst_21 = arith.constant 0.000000e+00 : f32
      %39 = vector.broadcast %cst_21 : f32 to vector<8x1xf32>
      %c0_22 = arith.constant 0 : index
      %c0_23 = arith.constant 0 : index
      %40 = vector.load %arg6[%c0_22, %c0_23] : memref<8x1xf32, #tpu.memory_space<vmem>>, vector<8x1xf32>
      tpu.vector_store %arg6[%c0_22, %c0_23], %39 {strides = array<i32>} : memref<8x1xf32, #tpu.memory_space<vmem>>, vector<8x1xf32>,
    } else {
    }
    %c0 = arith.constant 0 : index
    %c0_1 = arith.constant 0 : index
    %3 = vector.load %arg2[%c0, %c0_1] : memref<8x128xf32, #tpu.memory_space<vmem>>, vector<8x128xf32>
    %c0_2 = arith.constant 0 : index
    %c0_3 = arith.constant 0 : index
    %4 = vector.load %arg3[%c0_2, %c0_3] : memref<128x128xf32, #tpu.memory_space<vmem>>, vector<128x128xf32>
    %cst = arith.constant dense<0.000000e+00> : vector<8x128xf32>
    %5 = tpu.matmul %3, %4, %cst {dimension_numbers = #tpu.dot_dimension_numbers<[1], [1], [0], [0], [0, 0, 1, 0], [], []>} : vector<8x128xf32>, vector<128x128xf32>, vector<8x128xf32> -> vector<8x128xf32>
    %c1_i32 = arith.constant 1 : i32
    %6 = arith.muli %arg0, %c1_i32 : i32
    %7 = arith.addi %6, %arg1 : i32
    %c128_i32 = arith.constant 128 : i32
    %8 = arith.muli %7, %c128_i32 : i32
    %9 = tpu.iota {dimensions = array<i32: 1>} : vector<8x128xi32>
    %10 = vector.broadcast %8 : i32 to vector<8x128xi32>
    %11 = arith.addi %10, %9 : vector<8x128xi32>
    %c200_i32 = arith.constant 200 : i32
    %12 = vector.broadcast %c200_i32 : i32 to vector<8x128xi32>
    %13 = arith.cmpi slt, %11, %12 : vector<8x128xi32>
    %cst_4 = arith.constant -1.000000e+30 : f32
    %14 = vector.broadcast %cst_4 : f32 to vector<8x128xf32>
    %15 = arith.select %13, %5, %14 : vector<8x128xi1>, vector<8x128xf32>
    %c0_5 = arith.constant 0 : index
    %c0_6 = arith.constant 0 : index
    %16 = vector.load %arg5[%c0_5, %c0_6] : memref<8x1xf32, #tpu.memory_space<vmem>>, vector<8x1xf32>
    %cst_7 = arith.constant dense<0xFF800000> : vector<8xf32>
    %17 = vector.multi_reduction <maximumf>, %15, %cst_7 [1] : vector<8x128xf32> to vector<8xf32>
    %18 = vector.shape_cast %17 : vector<8xf32> to vector<8x1xf32>
    %19 = arith.maximumf %16, %18 : vector<8x1xf32>
    %20 = vector.broadcast %19 : vector<8x1xf32> to vector<8x128xf32>
    %21 = arith.subf %15, %20 : vector<8x128xf32>
    %22 = math.exp %21 : vector<8x128xf32>
    %cst_8 = arith.constant 0.000000e+00 : f32
    %23 = vector.broadcast %cst_8 : f32 to vector<8x128xf32>
    %24 = arith.select %13, %22, %23 : vector<8x128xi1>, vector<8x128xf32>
    %25 = arith.subf %16, %19 : vector<8x1xf32>
    %26 = math.exp %25 : vector<8x1xf32>
    %c0_9 = arith.constant 0 : index
    %c0_10 = arith.constant 0 : index
    %27 = vector.load %arg6[%c0_9, %c0_10] : memref<8x1xf32, #tpu.memory_space<vmem>>, vector<8x1xf32>
    %28 = arith.mulf %26, %27 : vector<8x1xf32>
    %cst_11 = arith.constant dense<0.000000e+00> : vector<8xf32>
    %29 = vector.multi_reduction <add>, %24, %cst_11 [1] : vector<8x128xf32> to vector<8xf32>
    %30 = vector.shape_cast %29 : vector<8xf32> to vector<8x1xf32>
    %31 = arith.addf %28, %30 : vector<8x1xf32>
    %c0_12 = arith.constant 0 : index
    %c0_13 = arith.constant 0 : index
    %32 = vector.load %arg6[%c0_12, %c0_13] : memref<8x1xf32, #tpu.memory_space<vmem>>, vector<8x1xf32>
    tpu.vector_store %arg6[%c0_12, %c0_13], %31 {strides = array<i32>} : memref<8x1xf32, #tpu.memory_space<vmem>>, vector<8x1xf32>,
    %c0_14 = arith.constant 0 : index
    %c0_15 = arith.constant 0 : index
    %33 = vector.load %arg5[%c0_14, %c0_15] : memref<8x1xf32, #tpu.memory_space<vmem>>, vector<8x1xf32>
    tpu.vector_store %arg5[%c0_14, %c0_15], %19 {strides = array<i32>} : memref<8x1xf32, #tpu.memory_space<vmem>>, vector<8x1xf32>,
    %c0_i32_16 = arith.constant 0 : i32
    %34 = arith.cmpi eq, %arg1, %c0_i32_16 : i32
    %35 = arith.extui %34 : i1 to i32
    %c0_i32_17 = arith.constant 0 : i32
    %36 = arith.cmpi ne, %35, %c0_i32_17 : i32
    scf.if %36 {
      %c0_18 = arith.constant 0 : index
      %c0_19 = arith.constant 0 : index
      %37 = vector.load %arg5[%c0_18, %c0_19] : memref<8x1xf32, #tpu.memory_space<vmem>>, vector<8x1xf32>
      %c0_20 = arith.constant 0 : index
      %c0_21 = arith.constant 0 : index
      %38 = vector.load %arg6[%c0_20, %c0_21] : memref<8x1xf32, #tpu.memory_space<vmem>>, vector<8x1xf32>
      %39 = math.log %38 : vector<8x1xf32>
      %40 = arith.addf %37, %39 : vector<8x1xf32>
      %c0_22 = arith.constant 0 : index
      %c0_23 = arith.constant 0 : index
      %41 = vector.load %arg4[%c0_22, %c0_23] : memref<8x1xf32, #tpu.memory_space<vmem>>, vector<8x1xf32>
      tpu.vector_store %arg4[%c0_22, %c0_23], %40 {strides = array<i32>} : memref<8x1xf32, #tpu.memory_space<vmem>>, vector<8x1xf32>,
    } else {
    }
    return
  }
  func.func @transform_0(%arg0: i32, %arg1: i32) -> (i32, i32) {
    %c0_i32 = arith.constant 0 : i32
    %c0_i32_0 = arith.constant 0 : i32
    %c0_i32_1 = arith.constant 0 : i32
    return %c0_i32, %c0_i32_0 : i32, i32
  }
  func.func @transform_1(%arg0: i32, %arg1: i32) -> (i32, i32) {
    %c1_i32 = arith.constant 1 : i32
    %0 = arith.muli %arg0, %c1_i32 : i32
    %1 = arith.addi %0, %arg1 : i32
    %c0_i32 = arith.constant 0 : i32
    %c0_i32_0 = arith.constant 0 : i32
    return %1, %c0_i32 : i32, i32
  }
  func.func @transform_2(%arg0: i32, %arg1: i32) -> (i32, i32) {
    %c0_i32 = arith.constant 0 : i32
    %c0_i32_0 = arith.constant 0 : i32
    return %arg0, %c0_i32 : i32, i32
  }
}

</mosaic_0001>

<bundles_post_ra>
// kernel: tpu_custom_call.1
= control target key start
LH: loop header
LB: loop body
LE: loop exit
PB: predicated region body
PF: predicated region fallthrough
CT: control target
= control target key end

     0   :  { %7 = vsyncpa [#allocation5], 0  ;;  %s919_s0 = inlined_call_operand.hbm [shape: f32[8,128], index: 0, kind: input, shape index: {}]   ;;  %s920_s1 = inlined_call_operand.hbm [shape: f32[256,128], index: 1, kind: input, shape index: {}]   ;;  %s921_s2 = inlined_call_operand.vmem [shape: f32[16,1], index: 2, kind: output, shape index: {}]  }
   0x1   :  { %8 = vsyncpa [#allocation7], 0 }
   0x2   :  { %10 = vsyncpa [#allocation7 + $0x1], 0  ;;  %s723_s9 = smov 0   ;;  %s725_s10 = smov 0  }
   0x3   :  { %s727_s11 = smov 0   ;;  %s729_s12 = smov 0  }
   0x4   :  { %s731_s13 = smov 0   ;;  %s733_s14 = smov 0  }
   0x5 LB: > { %s413_s15 = sadd.s32 4294967295, %s697_s14   ;;  %s58_s16 = sadd.s32 1, %s685_s11  ;;  %s697_s14 = sphi %s733_s14, %s16_s14   ;;  %s693_s13 = sphi %s731_s13, %s941_s13   ;;  %s689_s12 = sphi %s729_s12, %s940_s12   ;;  %s685_s11 = sphi %s727_s11, %s939_s11   ;;  %s681_s10 = sphi %s725_s10, %s938_s10   ;;  %s677_s9 = sphi %s723_s9, %s937_s9  }
   0x6   : > { %p65_p0 = scmp.ne.s32.totalorder %s685_s11, %s681_s10  ;;  %p66_p1 = scmp.eq.s32.totalorder %s697_s14, 0 }
   0x7   : > { %p71_p2 = scmp.ne.s32.totalorder %s681_s10, %s677_s9  ;;  %p757_p3 = scmp.eq.s32.totalorder %s413_s15, 0 }
   0x8   : > { %p67_p4 = por %p66_p1, %p65_p0  ;;  %p415_p5 = scmp.ge.s32.totalorder %s697_s14, 1 }
   0x9   : > { %s927_s17 = scalar_select %p757_p3, 1, 0 }
   0xa   : > { %p764_p6 = por %p757_p3, %p71_p2  ;;  %p108_p7 = scmp.lt.s32.totalorder %s697_s14, 3 }
   0xb   : > { %s699_s20 = smov [#allocation4]   ;;  %p520_p10 = scmp.lt.s32.totalorder %s697_s14, 2 }
   0xc   : > { %s928_s18 = scalar_select %p764_p6, 1, 0 }
   0xd   : > { %p769_p8 = pnand %p415_p5, %p108_p7  ;;  %s121_s21 = sshll.u32 %s699_s20, 4  ;;  %s122_s21 = int_to_ptr.vmem [resolvable:$true] %s121_s21 }
   0xe   : > { %s132_s22 = sand.u32 1, %s685_s11   ;;  %p783_p12 = pnand %p520_p10, %p67_p4 }
   0xf   : > { %s929_s19 = scalar_select %p769_p8, 1, 0 }
  0x10   : > { %p511_p9 = pneg %p769_p8  ;;  %s585_s27 = scalar_lea.hbm %s919_s0, 128 }
  0x11   : > { %s931_s24 = scalar_select %p783_p12, 1, 0 }
  0x12   : > { %p779_p11 = pnand %p511_p9, %p757_p3  ;;  %p586_p13 = scmp.ne.s32.totalorder %s919_s0, %s585_s27 }
  0x13   : > { %p592_p5 = scmp.lt.u32.totalorder %s585_s27, %s919_s0 }
  0x14   : > { %p587_p0 = pneg %p779_p11 }
  0x16   : > { %p588_p1 = pnand %p587_p0, %p586_p13 }
  0x18   : > { %p589_p2 = pneg %p588_p1 }
  0x1a   : > { %p594_p4 = pnand %p592_p5, %p589_p2 }
  0x1c   : > { %597 = shalt.err (!%p594_p4)
}
  0x1d   : > { %s598_s4 = scalar_lea.vmem %s122_s21, 128  ;;  %p606_p6 = scmp.lt.s32.totalorder %s122_s21, %s122_s21 }
  0x1e   : > { %p599_p7 = scmp.ne.s32.totalorder %s122_s21, %s598_s4  ;;  %p607_p3 = scmp.lt.s32.totalorder %s598_s4, %s598_s4 }
  0x20   : > { %p601_p9 = pnand %p599_p7, %p587_p0  ;;  %p608_p8 = por %p607_p3, %p606_p6 }
  0x22   : > { %p602_p10 = pneg %p601_p9 }
  0x24   : > { %p609_p12 = pnand %p608_p8, %p602_p10 }
  0x26   : > { %612 = shalt.err (!%p609_p12)
}
  0x27   : > { %514 = dma.hbm_to_vmem [thread:$0]  (!%p779_p11), %s919_s0, 128, %s122_s21, [#allocation5]  }
  0x28   : > { %s28_s7 = sadd.s32 1, %s693_s13  ;;  %s418_s8 = sshll.u32 %s132_s22, 7 }
  0x29   : > { %p30_p13 = scmp.ge.s32.totalorder %s28_s7, 2  ;;  %s428_s9 = sshll.u32 %s693_s13, 11 }
  0x2a   : > { %s136_s15 = scalar_lea.vmem [#allocation6], %s418_s8  ;;  %s812_s26 = scalar_lea.hbm %s920_s1, %s428_s9 }
  0x2b   : > { %s144_s20 = sshll.u32 %s136_s15, 4  ;;  %s943_s7 = smov (%p30_p13, %s28_s7), 0  ;;  %s814_s20 = int_to_ptr.vmem [resolvable:$true] %s144_s20 }
  0x2c   : > { %s55_s21 = ssub.s32 %s693_s13, %s943_s7  ;;  %s824_s28 = scalar_lea.sflag [#allocation7], %s132_s22 }
  0x2d   : > { %p818_p3 = scmp.eq.s32.totalorder %s55_s21, 0  ;;  %s613_s29 = scalar_lea.hbm %s812_s26, 2048 }
  0x2e   : > { %p614_p6 = scmp.ne.s32.totalorder %s812_s26, %s613_s29  ;;  %p933_p8 = scmp.ne.s32.totalorder %s931_s24, 0 }
  0x2f   : > { %s618_s4 = scalar_lea.hbm %s920_s1, 4096  ;;  %p619_p1 = scmp.lt.u32.totalorder %s812_s26, %s920_s1 }
  0x30   : > { %p615_p11 = pneg %p933_p8  ;;  %p620_p2 = scmp.lt.u32.totalorder %s618_s4, %s613_s29 }
  0x31   : > { %p622_p4 = scmp.lt.u32.totalorder %s613_s29, %s812_s26 }
  0x32   : > { %p616_p12 = pnand %p615_p11, %p614_p6  ;;  %p621_p5 = por %p620_p2, %p619_p1 }
  0x34   : > { %p617_p0 = pneg %p616_p12  ;;  %p623_p7 = por %p622_p4, %p621_p5 }
  0x36   : > { %p624_p9 = pnand %p623_p7, %p617_p0 }
  0x38   : > { %627 = shalt.err (!%p624_p9)
}
  0x39   : > { %s628_s22 = scalar_lea.vmem %s814_s20, 2048  ;;  %s700_s8 = smov [#allocation6]  }
  0x3a   : > { %p629_p10 = scmp.ne.s32.totalorder %s814_s20, %s628_s22  ;;  %s633_s9 = sshll.u32 %s700_s8, 4  ;;  %s634_s9 = int_to_ptr.vmem [resolvable:$false] %s633_s9 }
  0x3b   : > { %s635_s15 = scalar_lea.vmem %s634_s9, 4096  ;;  %p636_p12 = scmp.lt.s32.totalorder %s814_s20, %s634_s9 }
  0x3c   : > { %p631_p13 = pnand %p629_p10, %p615_p11  ;;  %p637_p1 = scmp.lt.s32.totalorder %s635_s15, %s628_s22 }
  0x3e   : > { %p632_p6 = pneg %p631_p13  ;;  %p638_p2 = por %p637_p1, %p636_p12 }
  0x40   : > { %p639_p5 = pnand %p638_p2, %p632_p6 }
  0x42   : > { %642 = shalt.err (!%p639_p5)
}
  0x43   : > { %s701_s23 = smov 128   ;;  %s702_s25 = smov 8  }
  0x44   : > { %518 = dma.hbm_to_vmem [thread:$0]  (!%p933_p8), %s812_s26, 2048, %s814_s20, %s824_s28, %s701_s23, %s701_s23, %s702_s25  }
  0x45   : > { %s857_s21 = scalar_select %p818_p3, %s685_s11, %s58_s16  }
  0x46   : > { %p934_p11 = scmp.ne.s32.totalorder %s929_s19, 0 }
  0x47   : > { %p935_p0 = scmp.ne.s32.totalorder (!%p934_p11), %s927_s17, 0 }
  0x48   : > { %156 = sbr.rel (%p934_p11) target bundleno = 820 (0x334), region = 28 }
  0x4f   : > { %668 = dma.done.wait (%p935_p0), [#allocation5], 128  }
  0x50   : > { %670 = vsyncadd (%p935_p0), [#allocation5], 4294967168  ;;  %s162_s29 = sand.u32 1, %s681_s10   ;;  %p936_p8 = scmp.ne.s32.totalorder %s928_s18, 0 }
  0x51   : > { %s423_s30 = sshll.u32 %s162_s29, 7  ;;  %s163_s3 = scalar_lea.sflag [#allocation7], %s162_s29 }
  0x52   : > { %s866_s24 = scalar_lea.vmem [#allocation6], %s423_s30 }
  0x53   : > { %672 = dma.done.wait (%p936_p8), %s163_s3, 2048  }
  0x54   : > { %674 = vsyncadd (%p936_p8), %s163_s3, 4294965248  ;;  %vm196_vm0 = vcmask 7168   ;;  %v703_v0 = vmov 0.0|0.0   ;;  %v704_v1 = vmov 0.0   ;;  %vm705_vm1 = vmmov 0   ;;  %v200_v2 = vld [vmem:[%s866_s24] sm:$0xff] }
  0x55   : > { %481 = vmatprep.subr.bf16.mxu0 %v703_v0  ;;  %198 = vst.msk [vmem:[#allocation3] sm:$0xff] %vm196_vm0, %v704_v1  ;;  %478 = vmatprep.mubr.msk.f32.mxu0 %vm705_vm1, %v704_v1  ;;  %v201_v3 = vld [vmem:[%s866_s24 + $0x8] sm:$0xff]  ;;  %v202_v5 = vld [vmem:[%s866_s24 + $0x10] sm:$0xff]  ;;  %v203_v6 = vld [vmem:[%s866_s24 + $0x18] sm:$0xff]  ;;  %v706_v27 = vmov -inf   ;;  %v288_v28 = vlaneseq  ;;  %s425_s16 = sshll.u32 %s689_s12, 7 }
  0x56   : > { %v482_v4 = vpack.c.bf16 %v201_v3, %v200_v2  ;;  %v485_v7 = vpack.c.bf16 %v203_v6, %v202_v5  ;;  %v204_v8 = vld [vmem:[%s866_s24 + $0x20] sm:$0xff]  ;;  %v205_v9 = vld [vmem:[%s866_s24 + $0x28] sm:$0xff]  ;;  %v206_v11 = vld [vmem:[%s866_s24 + $0x30] sm:$0xff]  ;;  %197 = vst.msk [vmem:[#allocation2] sm:$0xff] %vm196_vm0, %v706_v27  ;;  %v290_v30 = vstv %s425_s16  ;;  %v707_v35 = vmov 0   ;;  %p188_p3 = scmp.lt.s32.totalorder %s689_s12, 1 }
  0x57   : > { %v488_v10 = vpack.c.bf16 %v205_v9, %v204_v8  ;;  %v207_v12 = vld [vmem:[%s866_s24 + $0x38] sm:$0xff]  ;;  %v208_v14 = vld [vmem:[%s866_s24 + $0x40] sm:$0xff]  ;;  %v209_v15 = vld [vmem:[%s866_s24 + $0x48] sm:$0xff]  ;;  %v289_v29 = vand.u32 127, %v288_v28  ;;  %578 = vset.pattern.permute.xlu0 %v707_v35 }
  0x58   : > { %483 = vmatpush3.bf16.xpose.msra.mxu0 %v482_v4  ;;  %v491_v13 = vpack.c.bf16 %v207_v12, %v206_v11  ;;  %v494_v16 = vpack.c.bf16 %v209_v15, %v208_v14  ;;  %v210_v17 = vld [vmem:[%s866_s24 + $0x50] sm:$0xff]  ;;  %v211_v18 = vld [vmem:[%s866_s24 + $0x58] sm:$0xff]  ;;  %v212_v20 = vld [vmem:[%s866_s24 + $0x60] sm:$0xff]  ;;  %s945_s12 = smov (!%p188_p3, %s689_s12), 1 }
  0x59   : > { %484 = vmatprep.subr.bf16.mxu0 %v703_v0  ;;  %v497_v19 = vpack.c.bf16 %v211_v18, %v210_v17  ;;  %v213_v21 = vld [vmem:[%s866_s24 + $0x68] sm:$0xff]  ;;  %v214_v23 = vld [vmem:[%s866_s24 + $0x70] sm:$0xff]  ;;  %v215_v24 = vld [vmem:[%s866_s24 + $0x78] sm:$0xff]  ;;  %v291_v31 = vadd.s32 %v290_v30, %v289_v29  ;;  %s424_s17 = sshll.u32 %s945_s12, 3 }
  0x5a   : > { %v500_v22 = vpack.c.bf16 %v213_v21, %v212_v20  ;;  %v503_v25 = vpack.c.bf16 %v215_v24, %v214_v23  ;;  %v199_v26 = vld [vmem:[#allocation4] sm:$0xff]  ;;  %s191_s20 = scalar_lea.vmem %s921_s2, %s424_s17 }
  0x5b   : > { %vm292_vm2 = vcmp.lt.s32.totalorder %v291_v31, 200 }
  0x5c   : > { %v310_v47 = vld [vmem:[#allocation3] sm:$0xff] }
  0x5d   : > { %v294_v36 = vld [vmem:[#allocation2] sm:$0xff] }
  0x60   : > { %486 = vmatpush3.bf16.xpose.msra.mxu0 %v485_v7 }
  0x61   : > { %487 = vmatprep.subr.bf16.mxu0 %v703_v0 }
  0x68   : > { %489 = vmatpush3.bf16.xpose.msra.mxu0 %v488_v10 }
  0x69   : > { %490 = vmatprep.subr.bf16.mxu0 %v703_v0 }
  0x70   : > { %492 = vmatpush3.bf16.xpose.msra.mxu0 %v491_v13 }
  0x71   : > { %493 = vmatprep.subr.bf16.mxu0 %v703_v0 }
  0x78   : > { %495 = vmatpush3.bf16.xpose.msra.mxu0 %v494_v16 }
  0x79   : > { %496 = vmatprep.subr.bf16.mxu0 %v703_v0 }
  0x80   : > { %498 = vmatpush3.bf16.xpose.msra.mxu0 %v497_v19 }
  0x81   : > { %499 = vmatprep.subr.bf16.mxu0 %v703_v0 }
  0x88   : > { %501 = vmatpush3.bf16.xpose.msra.mxu0 %v500_v22 }
  0x89   : > { %502 = vmatprep.subr.bf16.mxu0 %v703_v0 }
  0x90   : > { %504 = vmatpush3.bf16.xpose.msra.mxu0 %v503_v25 }
  0x97   : > { %479 = vmatmul.mubr.f32.vlgmr.msra.gmra.mrb[0].mxu0 %v199_v26 }
 0x16a   : > { %v282_v32 = vpop.f32.mrb[0].mxu0 }
 0x16b   : > { %v480_v33 = vpop.f32.mrb[1].mxu0  ;;  %v293_v34 = vsel %vm292_vm2, %v282_v32, -1e+30 }
 0x16c   : > { %295 = vmax.xlane.f32.xlu0 %v293_v34 }
 0x1f9   : > { %v296_v37 = vpop.xlane.xlu0 %295 }
 0x1fa   : > { %v297_v38 = vmax.f32 %v294_v36, %v296_v37 }
 0x1fc   : > { %v307_v39 = vsub.f32 %v294_v36, %v297_v38  ;;  %317 = vst.msk [vmem:[#allocation2] sm:$0xff] %vm196_vm0, %v297_v38  ;;  %300 = vperm.xlu0 %578, %v297_v38  }
 0x1fe   : > { %v308_v45 = vmul.f32 1.442695, %v307_v39 }
 0x203   : > { %v321_v54 = vld [vmem:[#allocation2] sm:$0xff] }
 0x27b   : > { %v301_v40 = vpop.permute.xlu0 %300 }
 0x27c   : > { %v303_v41 = vsub.f32 %v293_v34, %v301_v40 }
 0x27e   : > { %v304_v42 = vmul.f32 1.442695, %v303_v41 }
 0x280   : > { %579 = vpow2.f32 %v304_v42 }
 0x281   : > { %581 = vpow2.f32 %v308_v45 }
 0x28a   : > { %v580_v43 = vpop.eup %579 }
 0x28b   : > { %v306_v44 = vsel %vm292_vm2, %v580_v43, 0.0  ;;  %v582_v46 = vpop.eup %581 }
 0x28c   : > { %312 = vadd.xlane.f32.xlu1 %v306_v44  ;;  %v311_v48 = vmul.f32 %v582_v46, %v310_v47 }
 0x319   : > { %v313_v49 = vpop.xlane.xlu1 %312 }
 0x31a   : > { %v314_v50 = vadd.f32 %v313_v49, %v311_v48 }
 0x31c   : > { %316 = vst.msk [vmem:[#allocation3] sm:$0xff] %vm196_vm0, %v314_v50 }
 0x323   : > { %v322_v51 = vld [vmem:[#allocation3] sm:$0xff] }
 0x324   : > { %583 = vlog2.f32 %v322_v51 }
 0x32e   : > { %v584_v52 = vpop.eup %583 }
 0x32f   : > { %v324_v53 = vmul.f32 0.6931472, %v584_v52 }
 0x331   : > { %v325_v55 = vadd.f32 %v324_v53, %v321_v54 }
 0x333   : > { %326 = vst.msk [vmem:[%s191_s20] sm:$0xff] %vm196_vm0, %v325_v55 }
 0x334 PF: > { %s16_s14 = sadd.s32 1, %s697_s14   ;;  %s937_s9 = smov %s681_s10 }
 0x335   : > { %p13_p4 = scmp.ge.s32.totalorder %s16_s14, 4   ;;  %s938_s10 = smov %s685_s11 }
 0x336   : > { %s939_s11 = smov %s857_s21  ;;  %s940_s12 = smov %s693_s13 }
 0x337   : > { %s941_s13 = smov %s943_s7  ;;  %15 = sbr.rel (!%p13_p4) target bundleno = 5 (0x5), region = 81 }
 0x33e   :  { %346 = vsyncpa [#allocation5], 1 }
 0x33f   :  { %348 = vsyncpa [#allocation5 + $0x1], 1 }
 0x340   :  { %349 = vsyncpa [#allocation7], 1 }
 0x341   :  { %351 = vsyncpa [#allocation7 + $0x1], 1 }

</bundles_post_ra>
